<compile_context>
chip_gen: v7x
topology: tpu7x:2x2x1
jax: 0.10.0
libtpu: 0.0.40
codegen_flags: <defaults>
</compile_context>

<pallas_src>
import functools
import math

import jax
import jax.numpy as jnp
from jax import lax
from jax.experimental import pallas as pl
from jax.experimental.pallas import tpu as pltpu


def _single_buffered_spec(block_shape, index_map):
    """BlockSpec for operands whose block never changes across the grid.

    Default pipelining allocates two buffers per input; a constant block gains
    nothing from double-buffering.  Falls back to the default spec if this JAX
    build does not expose `pipeline_mode`.
    """
    try:
        return pl.BlockSpec(block_shape, index_map,
                            pipeline_mode=pl.Buffered(1))
    except TypeError:  # older BlockSpec signature without pipeline_mode
        return pl.BlockSpec(block_shape, index_map)


# ----------------------------------------------------------------------------
# Kernels
# ----------------------------------------------------------------------------
def _generator_pointer_kernel(x_ref, wp_ref, bp_ref, wg_ref, bg_ref,
                              attn_ref, ids_ref, out_ref,
                              m_ref, z_ref, onehot_ref,
                              *, inv_temp, v_tile, n_v, compute_dtype):
    """Pointer-generator head, one (batch, seq-tile, vocab-tile) grid step.

    x:      (TT, D)        decoder hidden states (leading batch dim squeezed)
    wp:     (D, VT)        vocab projection weight tile (compute dtype)
    bp:     (1, VT)        vocab projection bias tile (f32)
    wg:     (1, D)         p_gen linear weight
    bg:     (1, 1)         p_gen linear bias
    attn:   (TT, S)        attention scores over source positions
    ids:    (S, 1)         source-token vocab ids (int32)
    out:    (TT, V)        resident output block (raw logits -> final log-mix)
    m, z:   (TT, 1)        online softmax running max / sum (scratch)
    onehot: (S, V)         per-batch one-hot scatter matrix (scratch)
    """
    t = pl.program_id(1)
    v = pl.program_id(2)

    # Per-batch one-hot scatter matrix, built once per batch.  Valid because
    # the seq/vocab grid axes are "arbitrary" (sequential on one core).
    @pl.when((t == 0) & (v == 0))
    def _build_onehot():
        src, vocab = onehot_ref.shape
        ids = ids_ref[...]                                          # (S, 1)
        cols = lax.broadcasted_iota(jnp.int32, (src, vocab), 1)
        onehot_ref[...] = (ids == cols).astype(onehot_ref.dtype)

    # Reset online-softmax statistics at the first vocab tile of each row set.
    @pl.when(v == 0)
    def _reset_stats():
        m_ref[...] = jnp.full(m_ref.shape, -jnp.inf, m_ref.dtype)
        z_ref[...] = jnp.zeros(z_ref.shape, z_ref.dtype)

    # Projection for this vocab tile: bf16 MXU matmul, f32 accumulate.
    xt = x_ref[...].astype(compute_dtype)                           # (TT, D)
    logit = jnp.dot(xt, wp_ref[...], preferred_element_type=jnp.float32)
    logit = logit + bp_ref[...]
    if inv_temp != 1.0:
        logit = logit * inv_temp

    # Online max / sum over the vocab axis.
    tile_max = jnp.max(logit, axis=-1, keepdims=True)
    m_new = jnp.maximum(m_ref[...], tile_max)
    z_ref[...] = (z_ref[...] * jnp.exp(m_ref[...] - m_new)
                  + jnp.sum(jnp.exp(logit - m_new), axis=-1, keepdims=True))
    m_ref[...] = m_new

    # Stash the raw (temperature-scaled) logits in the resident output block.
    off = pl.multiple_of(v * v_tile, v_tile)
    out_ref[:, pl.ds(off, v_tile)] = logit

    # Last vocab tile: mix generation / copy distributions, take the log.
    @pl.when(v == n_v - 1)
    def _finalize():
        # p_gen = sigmoid(x @ wg + bg); exact reciprocal (cheap per-row math).
        pg = (jnp.sum(x_ref[...] * wg_ref[...], axis=-1, keepdims=True)
              + bg_ref[...])
        alpha = 1.0 / (1.0 + jnp.exp(-pg))                          # (TT, 1)
        beta = 1.0 - alpha

        # Copy distribution over source positions (exact softmax denominator).
        a = attn_ref[...]
        if inv_temp != 1.0:
            a = a * inv_temp
        a = a - jnp.max(a, axis=-1, keepdims=True)
        ea = jnp.exp(a)
        attn_p = (ea / jnp.sum(ea, axis=-1, keepdims=True))
        attn_p = attn_p.astype(onehot_ref.dtype)                    # (TT, S)

        m = m_ref[...]
        inv_z = 1.0 / z_ref[...]          # exact reciprocal (review item)

        # Chunked finalize: keeps live temporaries at (TT, v_tile), never
        # (TT, V); each chunk does one small MXU matmul against the hoisted
        # per-batch one-hot slice (scatter_add over vocab == one-hot matmul).
        def _chunk(c, carry):
            o = pl.multiple_of(c * v_tile, v_tile)
            lg = out_ref[:, pl.ds(o, v_tile)]
            vocab_p = jnp.exp(lg - m) * inv_z
            copy_p = jnp.dot(attn_p, onehot_ref[:, pl.ds(o, v_tile)],
                             preferred_element_type=jnp.float32)
            out_ref[:, pl.ds(o, v_tile)] = jnp.log(alpha * vocab_p
                                                   + beta * copy_p)
            return carry

        lax.fori_loop(0, n_v, _chunk, 0)


def _generator_logsoftmax_kernel(x_ref, wp_ref, bp_ref, out_ref,
                                 m_ref, z_ref,
                                 *, v_tile, n_v, compute_dtype):
    """pointer_gen=False branch: log_softmax(proj(x), -1), vocab-tiled."""
    v = pl.program_id(2)

    @pl.when(v == 0)
    def _reset_stats():
        m_ref[...] = jnp.full(m_ref.shape, -jnp.inf, m_ref.dtype)
        z_ref[...] = jnp.zeros(z_ref.shape, z_ref.dtype)

    xt = x_ref[...].astype(compute_dtype)                           # (TT, D)
    logit = (jnp.dot(xt, wp_ref[...], preferred_element_type=jnp.float32)
             + bp_ref[...])

    tile_max = jnp.max(logit, axis=-1, keepdims=True)
    m_new = jnp.maximum(m_ref[...], tile_max)
    z_ref[...] = (z_ref[...] * jnp.exp(m_ref[...] - m_new)
                  + jnp.sum(jnp.exp(logit - m_new), axis=-1, keepdims=True))
    m_ref[...] = m_new

    off = pl.multiple_of(v * v_tile, v_tile)
    out_ref[:, pl.ds(off, v_tile)] = logit

    @pl.when(v == n_v - 1)
    def _finalize():
        shift = m_ref[...] + jnp.log(z_ref[...])

        def _chunk(c, carry):
            o = pl.multiple_of(c * v_tile, v_tile)
            out_ref[:, pl.ds(o, v_tile)] = out_ref[:, pl.ds(o, v_tile)] - shift
            return carry

        lax.fori_loop(0, n_v, _chunk, 0)


# ----------------------------------------------------------------------------
# Wrapper
# ----------------------------------------------------------------------------
@functools.partial(jax.jit, static_argnames=("temp", "pointer_gen", "t_tile",
                                              "v_tile", "use_bf16_matmul"))
def generator_forward(x, proj_w, proj_b, pgen_w=None, pgen_b=None,
                      attn_dist=None, enc_batch_extend_vocab=None,
                      temp=1.0, pointer_gen=True, t_tile=None, v_tile=None,
                      use_bf16_matmul=True):
    """x: (B, T, D); proj_w: (D, V); proj_b: (V,); pgen_w: (1, D) or (D,);
    attn_dist: (B, T, S); enc_batch_extend_vocab: (B, S) int."""
    batch, seq, d_model = x.shape
    vocab = proj_w.shape[1]

    # Seq tile: 128 keeps the MXU M-dim full while bounding the resident
    # (t_tile, V) output block (review: t_tile <= 128 for v5e/v7x budgets).
    if t_tile is None:
        t_tile = seq if seq <= 128 else 128
    assert seq % t_tile == 0
    assert t_tile == seq or t_tile % 8 == 0

    # Vocab tile: streamed weight blocks of (D, v_tile); v_tile multiple of
    # 128 keeps stores lane-aligned.  Falls back to a single tile when the
    # vocab is not 128-aligned.
    if v_tile is None:
        v_tile = min(vocab, 512) if vocab % 128 == 0 else vocab
    assert vocab % v_tile == 0
    assert v_tile == vocab or v_tile % 128 == 0
    n_v = vocab // v_tile

    compute_dtype = jnp.bfloat16 if use_bf16_matmul else jnp.float32
    # Store/stream the projection weight in the MXU compute dtype (halves DMA
    # and VMEM when bf16).  Callers should keep the weight in bf16 to avoid
    # the per-call cast.
    wp = proj_w.astype(compute_dtype)
    bp = proj_b.reshape(1, vocab).astype(jnp.float32)

    grid = (batch, seq // t_tile, n_v)
    x_spec = pl.BlockSpec((None, t_tile, d_model), lambda b, t, v: (b, t, 0))
    wp_spec = pl.BlockSpec((d_model, v_tile), lambda b, t, v: (0, v))
    bp_spec = pl.BlockSpec((1, v_tile), lambda b, t, v: (0, v))
    out_spec = pl.BlockSpec((None, t_tile, vocab), lambda b, t, v: (b, t, 0))
    out_shape = jax.ShapeDtypeStruct((batch, seq, vocab), jnp.float32)

    # batch axis parallel (megacore / 2-TC sharding); seq & vocab axes must be
    # sequential ("arbitrary") so the per-batch one-hot / online-softmax init
    # gates stay valid.  Explicit VMEM limit with headroom (fits v7x's 64 MiB).
    cparams = pltpu.CompilerParams(
        dimension_semantics=("parallel", "arbitrary", "arbitrary"),
        vmem_limit_bytes=48 * 1024 * 1024)

    stats_scratch = [pltpu.VMEM((t_tile, 1), jnp.float32),   # running max
                     pltpu.VMEM((t_tile, 1), jnp.float32)]   # running sum

    if not pointer_gen:
        kernel = functools.partial(_generator_logsoftmax_kernel,
                                   v_tile=v_tile, n_v=n_v,
                                   compute_dtype=compute_dtype)
        return pl.pallas_call(
            kernel,
            out_shape=out_shape,
            grid_spec=pltpu.PrefetchScalarGridSpec(
                num_scalar_prefetch=0, grid=grid,
                in_specs=[x_spec, wp_spec, bp_spec],
                out_specs=out_spec,
                scratch_shapes=stats_scratch),
            compiler_params=cparams,
        )(x, wp, bp)

    src = attn_dist.shape[-1]
    ids = enc_batch_extend_vocab.astype(jnp.int32).reshape(batch, src, 1)
    wg = pgen_w.reshape(1, d_model).astype(jnp.float32)
    bg = jnp.asarray(pgen_b, jnp.float32).reshape(1, 1)

    wg_spec = _single_buffered_spec((1, d_model), lambda b, t, v: (0, 0))
    bg_spec = _single_buffered_spec((1, 1), lambda b, t, v: (0, 0))
    attn_spec = pl.BlockSpec((None, t_tile, src), lambda b, t, v: (b, t, 0))
    ids_spec = pl.BlockSpec((None, src, 1), lambda b, t, v: (b, 0, 0))

    kernel = functools.partial(_generator_pointer_kernel,
                               inv_temp=float(1.0 / float(temp)),
                               v_tile=v_tile, n_v=n_v,
                               compute_dtype=compute_dtype)
    return pl.pallas_call(
        kernel,
        out_shape=out_shape,
        grid_spec=pltpu.PrefetchScalarGridSpec(
            num_scalar_prefetch=0, grid=grid,
            in_specs=[x_spec, wp_spec, bp_spec, wg_spec, bg_spec,
                      attn_spec, ids_spec],
            out_specs=out_spec,
            scratch_shapes=stats_scratch
                           + [pltpu.VMEM((src, vocab), compute_dtype)]),
        compiler_params=cparams,
    )(x, wp, bp, wg, bg, attn_dist, ids)


# ----------------------------------------------------------------------------
# Pure-JAX reference (for correctness check only)
# ----------------------------------------------------------------------------
def generator_reference(x, proj_w, proj_b, pgen_w=None, pgen_b=None,
                        attn_dist=None, enc_batch_extend_vocab=None,
                        temp=1.0, pointer_gen=True):
    logit = jnp.einsum("btd,dv->btv", x, proj_w) + proj_b
    if not pointer_gen:
        return jax.nn.log_softmax(logit, axis=-1)
    p_gen = jax.nn.sigmoid(
        jnp.einsum("btd,d->bt", x, pgen_w.reshape(-1))[..., None] + pgen_b)
    vocab_dist = jax.nn.softmax(logit / temp, axis=-1) * p_gen
    attn = jax.nn.softmax(attn_dist / temp, axis=-1) * (1.0 - p_gen)
    onehot = jax.nn.one_hot(enc_batch_extend_vocab, logit.shape[-1],
                            dtype=jnp.float32)                     # (B, S, V)
    scattered = jnp.einsum("bts,bsv->btv", attn, onehot)
    return jnp.log(vocab_dist + scattered)


# ----------------------------------------------------------------------------
# Demo / self-test
# ----------------------------------------------------------------------------
if __name__ == "__main__":
    key = jax.random.PRNGKey(0)
    ks = jax.random.split(key, 6)

    # Small shapes consistent with the module: batch=2, tgt seq=8, d_model=32,
    # vocab=256, src seq=16.
    B, T, D, V, S = 2, 8, 32, 256, 16

    x = jax.random.normal(ks[0], (B, T, D), jnp.float32)
    proj_w = jax.random.normal(ks[1], (D, V), jnp.float32) / math.sqrt(D)
    proj_b = 0.01 * jax.random.normal(ks[2], (V,), jnp.float32)
    pgen_w = jax.random.normal(ks[3], (1, D), jnp.float32) / math.sqrt(D)
    pgen_b = jnp.zeros((), jnp.float32)
    attn = jax.random.normal(ks[4], (B, T, S), jnp.float32)
    enc_ids = jax.random.randint(ks[5], (B, S), 0, V, jnp.int32)

    # pointer_gen=True, bf16 MXU operands, 2 vocab tiles (online-softmax path).
    out_ptr = generator_forward(x, proj_w, proj_b, pgen_w, pgen_b,
                                attn, enc_ids, temp=1.0, pointer_gen=True,
                                v_tile=128, use_bf16_matmul=True)
    out_ptr = jax.block_until_ready(out_ptr)
    ref_ptr = generator_reference(x, proj_w, proj_b, pgen_w, pgen_b,
                                  attn, enc_ids, temp=1.0, pointer_gen=True)
    assert out_ptr.shape == (B, T, V), out_ptr.shape
    assert bool(jnp.all(jnp.isfinite(out_ptr)))
    err_bf16 = float(jnp.max(jnp.abs(out_ptr - ref_ptr)))
    # bf16 MXU operands bound the log-prob error (~1e-2 level, review item).
    assert err_bf16 < 5e-2, f"pointer-gen bf16 path mismatch: {err_bf16}"

    # pointer_gen=True, f32 operands, temp!=1 (tight check of the fused math).
    out_f32 = generator_forward(x, proj_w, proj_b, pgen_w, pgen_b,
                                attn, enc_ids, temp=2.0, pointer_gen=True,
                                v_tile=128, use_bf16_matmul=False)
    out_f32 = jax.block_until_ready(out_f32)
    ref_f32 = generator_reference(x, proj_w, proj_b, pgen_w, pgen_b,
                                  attn, enc_ids, temp=2.0, pointer_gen=True)
    err_f32 = float(jnp.max(jnp.abs(out_f32 - ref_f32)))
    assert err_f32 < 2e-3, f"pointer-gen f32 path mismatch: {err_f32}"

    # pointer_gen=False path (plain log_softmax head), single vocab tile.
    out_lsm = generator_forward(x, proj_w, proj_b, pointer_gen=False,
                                use_bf16_matmul=True)
    out_lsm = jax.block_until_ready(out_lsm)
    ref_lsm = generator_reference(x, proj_w, proj_b, pointer_gen=False)
    assert out_lsm.shape == (B, T, V), out_lsm.shape
    err_lsm = float(jnp.max(jnp.abs(out_lsm - ref_lsm)))
    assert err_lsm < 5e-2, f"log_softmax path mismatch: {err_lsm}"

    print("KERNEL_OK")
</pallas_src>

<mosaic_0001>
module attributes {stable_mosaic.version = 11 : i64} {
  func.func @_generator_pointer_kernel(%arg0: i32, %arg1: i32, %arg2: i32, %arg3: memref<1x8x32xf32, #tpu.memory_space<vmem>>, %arg4: memref<32x128xbf16, #tpu.memory_space<vmem>>, %arg5: memref<1x128xf32, #tpu.memory_space<vmem>>, %arg6: memref<1x32xf32, #tpu.memory_space<vmem>>, %arg7: memref<1x1xf32, #tpu.memory_space<vmem>>, %arg8: memref<1x8x16xf32, #tpu.memory_space<vmem>>, %arg9: memref<1x16x1xi32, #tpu.memory_space<vmem>>, %arg10: memref<1x8x256xf32, #tpu.memory_space<vmem>>, %arg11: memref<8x1xf32, #tpu.memory_space<vmem>>, %arg12: memref<8x1xf32, #tpu.memory_space<vmem>>, %arg13: memref<16x256xbf16, #tpu.memory_space<vmem>>) attributes {dimension_semantics = [#tpu.dimension_semantics<parallel>, #tpu.dimension_semantics<arbitrary>, #tpu.dimension_semantics<arbitrary>], iteration_bounds = array<i64: 2, 1, 2>, scalar_prefetch = 0 : i64, scratch_operands = 3 : i64, tpu.core_type = #tpu.core_type<tc>, window_params = [{transform_indices = @transform_0, window_bounds = array<i64: 1, 8, 32>}, {transform_indices = @transform_1, window_bounds = array<i64: 32, 128>}, {transform_indices = @transform_2, window_bounds = array<i64: 1, 128>}, {pipeline_mode = #tpu.pipeline_mode<synchronous>, transform_indices = @transform_3, window_bounds = array<i64: 1, 32>}, {pipeline_mode = #tpu.pipeline_mode<synchronous>, transform_indices = @transform_4, window_bounds = array<i64: 1, 1>}, {transform_indices = @transform_5, window_bounds = array<i64: 1, 8, 16>}, {transform_indices = @transform_6, window_bounds = array<i64: 1, 16, 1>}, {transform_indices = @transform_7, window_bounds = array<i64: 1, 8, 256>}]} {
    %c0_i32 = arith.constant 0 : i32
    %0 = arith.cmpi eq, %arg1, %c0_i32 : i32
    %c0_i32_0 = arith.constant 0 : i32
    %1 = arith.cmpi eq, %arg2, %c0_i32_0 : i32
    %2 = arith.andi %0, %1 : i1
    %3 = arith.extui %2 : i1 to i32
    %c0_i32_1 = arith.constant 0 : i32
    %4 = arith.cmpi ne, %3, %c0_i32_1 : i32
    scf.if %4 {
      %c0_25 = arith.constant 0 : index
      %c0_26 = arith.constant 0 : index
      %c0_27 = arith.constant 0 : index
      %42 = vector.load %arg9[%c0_25, %c0_26, %c0_27] : memref<1x16x1xi32, #tpu.memory_space<vmem>>, vector<1x16x1xi32>
      %43 = vector.shape_cast %42 : vector<1x16x1xi32> to vector<16x1xi32>
      %44 = tpu.iota {dimensions = array<i32: 1>} : vector<16x256xi32>
      %45 = vector.broadcast %43 : vector<16x1xi32> to vector<16x256xi32>
      %46 = arith.cmpi eq, %45, %44 : vector<16x256xi32>
      %47 = arith.extui %46 : vector<16x256xi1> to vector<16x256xi32>
      %48 = arith.sitofp %47 : vector<16x256xi32> to vector<16x256xf32>
      %49 = arith.truncf %48 : vector<16x256xf32> to vector<16x256xbf16>
      %c0_28 = arith.constant 0 : index
      %c0_29 = arith.constant 0 : index
      %50 = vector.load %arg13[%c0_28, %c0_29] : memref<16x256xbf16, #tpu.memory_space<vmem>>, vector<16x256xbf16>
      tpu.vector_store %arg13[%c0_28, %c0_29], %49 {strides = array<i32>} : memref<16x256xbf16, #tpu.memory_space<vmem>>, vector<16x256xbf16>,
    } else {
    }
    %c0_i32_2 = arith.constant 0 : i32
    %5 = arith.cmpi eq, %arg2, %c0_i32_2 : i32
    %6 = arith.extui %5 : i1 to i32
    %c0_i32_3 = arith.constant 0 : i32
    %7 = arith.cmpi ne, %6, %c0_i32_3 : i32
    scf.if %7 {
      %cst_25 = arith.constant 0xFF800000 : f32
      %42 = vector.broadcast %cst_25 : f32 to vector<8x1xf32>
      %c0_26 = arith.constant 0 : index
      %c0_27 = arith.constant 0 : index
      %43 = vector.load %arg11[%c0_26, %c0_27] : memref<8x1xf32, #tpu.memory_space<vmem>>, vector<8x1xf32>
      tpu.vector_store %arg11[%c0_26, %c0_27], %42 {strides = array<i32>} : memref<8x1xf32, #tpu.memory_space<vmem>>, vector<8x1xf32>,
      %cst_28 = arith.constant 0.000000e+00 : f32
      %44 = vector.broadcast %cst_28 : f32 to vector<8x1xf32>
      %c0_29 = arith.constant 0 : index
      %c0_30 = arith.constant 0 : index
      %45 = vector.load %arg12[%c0_29, %c0_30] : memref<8x1xf32, #tpu.memory_space<vmem>>, vector<8x1xf32>
      tpu.vector_store %arg12[%c0_29, %c0_30], %44 {strides = array<i32>} : memref<8x1xf32, #tpu.memory_space<vmem>>, vector<8x1xf32>,
    } else {
    }
    %c0 = arith.constant 0 : index
    %c0_4 = arith.constant 0 : index
    %c0_5 = arith.constant 0 : index
    %8 = vector.load %arg3[%c0, %c0_4, %c0_5] : memref<1x8x32xf32, #tpu.memory_space<vmem>>, vector<1x8x32xf32>
    %9 = vector.shape_cast %8 : vector<1x8x32xf32> to vector<8x32xf32>
    %10 = arith.truncf %9 : vector<8x32xf32> to vector<8x32xbf16>
    %c0_6 = arith.constant 0 : index
    %c0_7 = arith.constant 0 : index
    %11 = vector.load %arg4[%c0_6, %c0_7] : memref<32x128xbf16, #tpu.memory_space<vmem>>, vector<32x128xbf16>
    %cst = arith.constant dense<0.000000e+00> : vector<8x128xf32>
    %12 = tpu.matmul %10, %11, %cst {dimension_numbers = #tpu.dot_dimension_numbers<[1], [0], [0], [1], [0, 0, 1, 1], [], []>} : vector<8x32xbf16>, vector<32x128xbf16>, vector<8x128xf32> -> vector<8x128xf32>
    %c0_8 = arith.constant 0 : index
    %c0_9 = arith.constant 0 : index
    %13 = vector.load %arg5[%c0_8, %c0_9] : memref<1x128xf32, #tpu.memory_space<vmem>>, vector<1x128xf32>
    %14 = vector.broadcast %13 : vector<1x128xf32> to vector<8x128xf32>
    %15 = arith.addf %12, %14 : vector<8x128xf32>
    %cst_10 = arith.constant dense<0xFF800000> : vector<8xf32>
    %16 = vector.multi_reduction <maximumf>, %15, %cst_10 [1] : vector<8x128xf32> to vector<8xf32>
    %17 = vector.shape_cast %16 : vector<8xf32> to vector<8x1xf32>
    %c0_11 = arith.constant 0 : index
    %c0_12 = arith.constant 0 : index
    %18 = vector.load %arg11[%c0_11, %c0_12] : memref<8x1xf32, #tpu.memory_space<vmem>>, vector<8x1xf32>
    %19 = arith.maximumf %18, %17 : vector<8x1xf32>
    %c0_13 = arith.constant 0 : index
    %c0_14 = arith.constant 0 : index
    %20 = vector.load %arg12[%c0_13, %c0_14] : memref<8x1xf32, #tpu.memory_space<vmem>>, vector<8x1xf32>
    %c0_15 = arith.constant 0 : index
    %c0_16 = arith.constant 0 : index
    %21 = vector.load %arg11[%c0_15, %c0_16] : memref<8x1xf32, #tpu.memory_space<vmem>>, vector<8x1xf32>
    %22 = arith.subf %21, %19 : vector<8x1xf32>
    %23 = math.exp %22 : vector<8x1xf32>
    %24 = arith.mulf %20, %23 : vector<8x1xf32>
    %25 = vector.broadcast %19 : vector<8x1xf32> to vector<8x128xf32>
    %26 = arith.subf %15, %25 : vector<8x128xf32>
    %27 = math.exp %26 : vector<8x128xf32>
    %cst_17 = arith.constant dense<0.000000e+00> : vector<8xf32>
    %28 = vector.multi_reduction <add>, %27, %cst_17 [1] : vector<8x128xf32> to vector<8xf32>
    %29 = vector.shape_cast %28 : vector<8xf32> to vector<8x1xf32>
    %30 = arith.addf %24, %29 : vector<8x1xf32>
    %c0_18 = arith.constant 0 : index
    %c0_19 = arith.constant 0 : index
    %31 = vector.load %arg12[%c0_18, %c0_19] : memref<8x1xf32, #tpu.memory_space<vmem>>, vector<8x1xf32>
    tpu.vector_store %arg12[%c0_18, %c0_19], %30 {strides = array<i32>} : memref<8x1xf32, #tpu.memory_space<vmem>>, vector<8x1xf32>,
    %c0_20 = arith.constant 0 : index
    %c0_21 = arith.constant 0 : index
    %32 = vector.load %arg11[%c0_20, %c0_21] : memref<8x1xf32, #tpu.memory_space<vmem>>, vector<8x1xf32>
    tpu.vector_store %arg11[%c0_20, %c0_21], %19 {strides = array<i32>} : memref<8x1xf32, #tpu.memory_space<vmem>>, vector<8x1xf32>,
    %c128_i32 = arith.constant 128 : i32
    %33 = arith.muli %arg2, %c128_i32 : i32
    %34 = tpu.assume_multiple %33, 128 : i32
    %c0_22 = arith.constant 0 : index
    %c0_23 = arith.constant 0 : index
    %35 = arith.index_cast %34 : i32 to index
    %36 = vector.load %arg10[%c0_22, %c0_23, %35] : memref<1x8x256xf32, #tpu.memory_space<vmem>>, vector<1x8x128xf32>
    %37 = vector.shape_cast %36 : vector<1x8x128xf32> to vector<8x128xf32>
    %38 = vector.shape_cast %15 : vector<8x128xf32> to vector<1x8x128xf32>
    tpu.vector_store %arg10[%c0_22, %c0_23, %35], %38 {strides = array<i32>} : memref<1x8x256xf32, #tpu.memory_space<vmem>>, vector<1x8x128xf32>,
    %c1_i32 = arith.constant 1 : i32
    %39 = arith.cmpi eq, %arg2, %c1_i32 : i32
    %40 = arith.extui %39 : i1 to i32
    %c0_i32_24 = arith.constant 0 : i32
    %41 = arith.cmpi ne, %40, %c0_i32_24 : i32
    scf.if %41 {
      %c0_25 = arith.constant 0 : index
      %c0_26 = arith.constant 0 : index
      %c0_27 = arith.constant 0 : index
      %42 = vector.load %arg3[%c0_25, %c0_26, %c0_27] : memref<1x8x32xf32, #tpu.memory_space<vmem>>, vector<1x8x32xf32>
      %43 = vector.shape_cast %42 : vector<1x8x32xf32> to vector<8x32xf32>
      %c0_28 = arith.constant 0 : index
      %c0_29 = arith.constant 0 : index
      %44 = vector.load %arg6[%c0_28, %c0_29] : memref<1x32xf32, #tpu.memory_space<vmem>>, vector<1x32xf32>
      %45 = vector.broadcast %44 : vector<1x32xf32> to vector<8x32xf32>
      %46 = arith.mulf %43, %45 : vector<8x32xf32>
      %cst_30 = arith.constant dense<0.000000e+00> : vector<8xf32>
      %47 = vector.multi_reduction <add>, %46, %cst_30 [1] : vector<8x32xf32> to vector<8xf32>
      %48 = vector.shape_cast %47 : vector<8xf32> to vector<8x1xf32>
      %c0_31 = arith.constant 0 : index
      %c0_32 = arith.constant 0 : index
      %49 = vector.load %arg7[%c0_31, %c0_32] : memref<1x1xf32, #tpu.memory_space<vmem>>, vector<1x1xf32>
      %50 = vector.broadcast %49 : vector<1x1xf32> to vector<8x1xf32>
      %51 = arith.addf %48, %50 : vector<8x1xf32>
      %cst_33 = arith.constant 0.000000e+00 : f32
      %52 = vector.broadcast %cst_33 : f32 to vector<8x1xf32>
      %53 = arith.subf %52, %51 : vector<8x1xf32>
      %54 = math.exp %53 : vector<8x1xf32>
      %cst_34 = arith.constant 1.000000e+00 : f32
      %55 = vector.broadcast %cst_34 : f32 to vector<8x1xf32>
      %56 = arith.addf %55, %54 : vector<8x1xf32>
      %cst_35 = arith.constant 1.000000e+00 : f32
      %57 = vector.broadcast %cst_35 : f32 to vector<8x1xf32>
      %58 = arith.divf %57, %56 : vector<8x1xf32>
      %cst_36 = arith.constant 1.000000e+00 : f32
      %59 = vector.broadcast %cst_36 : f32 to vector<8x1xf32>
      %60 = arith.subf %59, %58 : vector<8x1xf32>
      %c0_37 = arith.constant 0 : index
      %c0_38 = arith.constant 0 : index
      %c0_39 = arith.constant 0 : index
      %61 = vector.load %arg8[%c0_37, %c0_38, %c0_39] : memref<1x8x16xf32, #tpu.memory_space<vmem>>, vector<1x8x16xf32>
      %62 = vector.shape_cast %61 : vector<1x8x16xf32> to vector<8x16xf32>
      %cst_40 = arith.constant dense<0xFF800000> : vector<8xf32>
      %63 = vector.multi_reduction <maximumf>, %62, %cst_40 [1] : vector<8x16xf32> to vector<8xf32>
      %64 = vector.shape_cast %63 : vector<8xf32> to vector<8x1xf32>
      %65 = vector.broadcast %64 : vector<8x1xf32> to vector<8x16xf32>
      %66 = arith.subf %62, %65 : vector<8x16xf32>
      %67 = math.exp %66 : vector<8x16xf32>
      %cst_41 = arith.constant dense<0.000000e+00> : vector<8xf32>
      %68 = vector.multi_reduction <add>, %67, %cst_41 [1] : vector<8x16xf32> to vector<8xf32>
      %69 = vector.shape_cast %68 : vector<8xf32> to vector<8x1xf32>
      %70 = vector.broadcast %69 : vector<8x1xf32> to vector<8x16xf32>
      %71 = arith.divf %67, %70 : vector<8x16xf32>
      %72 = arith.truncf %71 : vector<8x16xf32> to vector<8x16xbf16>
      %c0_42 = arith.constant 0 : index
      %c0_43 = arith.constant 0 : index
      %73 = vector.load %arg11[%c0_42, %c0_43] : memref<8x1xf32, #tpu.memory_space<vmem>>, vector<8x1xf32>
      %c0_44 = arith.constant 0 : index
      %c0_45 = arith.constant 0 : index
      %74 = vector.load %arg12[%c0_44, %c0_45] : memref<8x1xf32, #tpu.memory_space<vmem>>, vector<8x1xf32>
      %cst_46 = arith.constant 1.000000e+00 : f32
      %75 = vector.broadcast %cst_46 : f32 to vector<8x1xf32>
      %76 = arith.divf %75, %74 : vector<8x1xf32>
      %c0_i32_47 = arith.constant 0 : i32
      %c2_i32 = arith.constant 2 : i32
      %77 = arith.addi %c0_i32_47, %c2_i32 : i32
      %c1_i32_48 = arith.constant 1 : i32
      scf.for %arg14 = %c0_i32_47 to %77 step %c1_i32_48  : i32 {
        %c128_i32_50 = arith.constant 128 : i32
        %78 = arith.muli %arg14, %c128_i32_50 : i32
        %79 = tpu.assume_multiple %78, 128 : i32
        %c0_51 = arith.constant 0 : index
        %c0_52 = arith.constant 0 : index
        %80 = arith.index_cast %79 : i32 to index
        %81 = vector.load %arg10[%c0_51, %c0_52, %80] : memref<1x8x256xf32, #tpu.memory_space<vmem>>, vector<1x8x128xf32>
        %82 = vector.shape_cast %81 : vector<1x8x128xf32> to vector<8x128xf32>
        %83 = vector.broadcast %73 : vector<8x1xf32> to vector<8x128xf32>
        %84 = arith.subf %82, %83 : vector<8x128xf32>
        %85 = math.exp %84 : vector<8x128xf32>
        %86 = vector.broadcast %76 : vector<8x1xf32> to vector<8x128xf32>
        %87 = arith.mulf %85, %86 : vector<8x128xf32>
        %c0_53 = arith.constant 0 : index
        %88 = arith.index_cast %79 : i32 to index
        %89 = vector.load %arg13[%c0_53, %88] : memref<16x256xbf16, #tpu.memory_space<vmem>>, vector<16x128xbf16>
        %cst_54 = arith.constant dense<0.000000e+00> : vector<8x128xf32>
        %90 = tpu.matmul %72, %89, %cst_54 {dimension_numbers = #tpu.dot_dimension_numbers<[1], [0], [0], [1], [0, 0, 1, 1], [], []>} : vector<8x16xbf16>, vector<16x128xbf16>, vector<8x128xf32> -> vector<8x128xf32>
        %91 = vector.broadcast %58 : vector<8x1xf32> to vector<8x128xf32>
        %92 = arith.mulf %91, %87 : vector<8x128xf32>
        %93 = vector.broadcast %60 : vector<8x1xf32> to vector<8x128xf32>
        %94 = arith.mulf %93, %90 : vector<8x128xf32>
        %95 = arith.addf %92, %94 : vector<8x128xf32>
        %96 = math.log %95 : vector<8x128xf32>
        %c0_55 = arith.constant 0 : index
        %c0_56 = arith.constant 0 : index
        %97 = arith.index_cast %79 : i32 to index
        %98 = vector.load %arg10[%c0_55, %c0_56, %97] : memref<1x8x256xf32, #tpu.memory_space<vmem>>, vector<1x8x128xf32>
        %99 = vector.shape_cast %98 : vector<1x8x128xf32> to vector<8x128xf32>
        %100 = vector.shape_cast %96 : vector<8x128xf32> to vector<1x8x128xf32>
        tpu.vector_store %arg10[%c0_55, %c0_56, %97], %100 {strides = array<i32>} : memref<1x8x256xf32, #tpu.memory_space<vmem>>, vector<1x8x128xf32>,
      }
      %c2_i32_49 = arith.constant 2 : i32
    } else {
    }
    return
  }
  func.func @transform_0(%arg0: i32, %arg1: i32, %arg2: i32) -> (i32, i32, i32) {
    %c0_i32 = arith.constant 0 : i32
    %c0_i32_0 = arith.constant 0 : i32
    return %arg0, %arg1, %c0_i32 : i32, i32, i32
  }
  func.func @transform_1(%arg0: i32, %arg1: i32, %arg2: i32) -> (i32, i32) {
    %c0_i32 = arith.constant 0 : i32
    %c0_i32_0 = arith.constant 0 : i32
    return %c0_i32, %arg2 : i32, i32
  }
  func.func @transform_2(%arg0: i32, %arg1: i32, %arg2: i32) -> (i32, i32) {
    %c0_i32 = arith.constant 0 : i32
    %c0_i32_0 = arith.constant 0 : i32
    return %c0_i32, %arg2 : i32, i32
  }
  func.func @transform_3(%arg0: i32, %arg1: i32, %arg2: i32) -> (i32, i32) {
    %c0_i32 = arith.constant 0 : i32
    %c0_i32_0 = arith.constant 0 : i32
    %c0_i32_1 = arith.constant 0 : i32
    return %c0_i32, %c0_i32_0 : i32, i32
  }
  func.func @transform_4(%arg0: i32, %arg1: i32, %arg2: i32) -> (i32, i32) {
    %c0_i32 = arith.constant 0 : i32
    %c0_i32_0 = arith.constant 0 : i32
    %c0_i32_1 = arith.constant 0 : i32
    return %c0_i32, %c0_i32_0 : i32, i32
  }
  func.func @transform_5(%arg0: i32, %arg1: i32, %arg2: i32) -> (i32, i32, i32) {
    %c0_i32 = arith.constant 0 : i32
    %c0_i32_0 = arith.constant 0 : i32
    return %arg0, %arg1, %c0_i32 : i32, i32, i32
  }
  func.func @transform_6(%arg0: i32, %arg1: i32, %arg2: i32) -> (i32, i32, i32) {
    %c0_i32 = arith.constant 0 : i32
    %c0_i32_0 = arith.constant 0 : i32
    %c0_i32_1 = arith.constant 0 : i32
    return %arg0, %c0_i32, %c0_i32_0 : i32, i32, i32
  }
  func.func @transform_7(%arg0: i32, %arg1: i32, %arg2: i32) -> (i32, i32, i32) {
    %c0_i32 = arith.constant 0 : i32
    %c0_i32_0 = arith.constant 0 : i32
    return %arg0, %arg1, %c0_i32 : i32, i32, i32
  }
}

</mosaic_0001>

<bundles_post_ra>
// kernel: generator_forward.1
= control target key start
LH: loop header
LB: loop body
LE: loop exit
PB: predicated region body
PF: predicated region fallthrough
CT: control target
= control target key end

     0   :  { %s1470_s0 = inlined_call_operand.vmem [shape: f32[2,8,32], index: 0, kind: input, shape index: {}]   ;;  %s1471_s1 = inlined_call_operand.vmem [shape: bf16[32,256], index: 1, kind: input, shape index: {}]   ;;  %s1472_s2 = inlined_call_operand.vmem [shape: f32[1,256], index: 2, kind: input, shape index: {}]   ;;  %s1473_s3 = inlined_call_operand.vmem [shape: f32[1,32], index: 3, kind: input, shape index: {}]   ;;  %s1474_s4 = inlined_call_operand.<no memory space> [shape: f32[1,1], index: 4, kind: input, shape index: {}]   ;;  %s1475_s5 = inlined_call_operand.vmem [shape: f32[2,8,16], index: 5, kind: input, shape index: {}]   ;;  %s1476_s6 = inlined_call_operand.vmem [shape: s32[2,16,1], index: 6, kind: input, shape index: {}]   ;;  %s1477_s7 = inlined_call_operand.hbm [shape: f32[2,8,256], index: 7, kind: output, shape index: {}]  }
   0x1   :  { %1486 = sst [smem:[#allocation19_spill]] %s1471_s1  ;;  %v12_v0 = vstv %s1474_s4 }
   0x2   :  { %13 = vst [vmem:[#allocation5] sm:$0x1] %v12_v0 }
   0x3   :  { %14 = vsyncpa [#allocation8], 0 }
   0x4   :  { %16 = vsyncpa [#allocation8 + $0x1], 0  ;;  %s1241_s26 = smov 0   ;;  %s1243_s27 = smov 0  }
   0x5   :  { %s1245_s28 = smov 0   ;;  %s1247_s29 = smov 0  }
   0x6   :  { %s1249_s30 = smov 0   ;;  %s1251_s8 = smov 0  }
   0x7   :  { %s1253_s9 = smov 0   ;;  %s1255_s10 = smov 0  }
   0x8   :  { %s1257_s4 = smov 0   ;;  %s1259_s11 = smov 0  }
   0x9 LB: > { %1487 = sst [smem:[#allocation10_spill]] %s1153_s28  ;;  %s879_s12 = sadd.s32 4294967295, %s1181_s11   ;;  %s1181_s11 = sphi %s1259_s11, %s22_s11   ;;  %s1177_s4 = sphi %s1257_s4, %s1509_s4   ;;  %s1173_s10 = sphi %s1255_s10, %s1508_s10   ;;  %s1169_s9 = sphi %s1253_s9, %s1507_s9   ;;  %s1165_s8 = sphi %s1251_s8, %s1506_s8   ;;  %s1161_s30 = sphi %s1249_s30, %s1505_s30   ;;  %s1157_s29 = sphi %s1247_s29, %s1504_s29   ;;  %s1153_s28 = sphi %s1245_s28, %s1503_s28   ;;  %s1149_s27 = sphi %s1243_s27, %s1511_s27   ;;  %s1145_s26 = sphi %s1241_s26, %s1510_s26  }
   0xa   : > { %1488 = sst [smem:[#allocation11_spill]] %s1161_s30  ;;  %s880_s13 = sadd.s32 4294967294, %s1181_s11  }
   0xb   : > { %1489 = sst [smem:[#allocation12_spill]] %s1173_s10  ;;  %s34_s14 = sadd.s32 1, %s1173_s10 }
   0xc   : > { %1490 = sst [smem:[#allocation13_spill]] %s1177_s4  ;;  %s41_s15 = sadd.s32 1, %s1177_s4 }
   0xd   : > { %p35_p0 = scmp.ge.s32.totalorder %s34_s14, 2  ;;  %s76_s16 = sadd.s32 1, %s1161_s30 }
   0xe   : > { %p83_p1 = scmp.ne.s32.totalorder %s1161_s30, %s1157_s29  ;;  %p84_p2 = scmp.eq.s32.totalorder %s1181_s11, 0 }
   0xf   : > { %s1513_s14 = smov (%p35_p0, %s34_s14), 0  ;;  %s1515_s15 = smov (!%p35_p0, %s41_s15), %s1177_s4 }
  0x10   : > { %1491 = sst [smem:[#allocation14_spill]] %s1513_s14  ;;  %s73_s17 = ssub.s32 %s1173_s10, %s1513_s14 }
  0x11   : > { %p1304_p3 = por %p84_p2, %p83_p1  ;;  %p43_p4 = scmp.ge.s32.totalorder %s1515_s15, 2 }
  0x12   : > { %p74_p5 = scmp.eq.s32.totalorder %s73_s17, 0  ;;  %s226_s19 = sadd.s32 1, %s1153_s28 }
  0x13   : > { %p236_p6 = scmp.ne.s32.totalorder %s1153_s28, %s1149_s27  ;;  %s1517_s15 = smov (%p43_p4, %s1515_s15), 0 }
  0x14   : > { %1493 = sst [smem:[#allocation15_spill]] %s1517_s15  ;;  %s221_s21 = ssub.s32 %s1177_s4, %s1517_s15 }
  0x15   : > { %s1314_s20 = scalar_select %p74_p5, %s1161_s30, %s76_s16  }
  0x16   : > { %p237_p7 = scmp.eq.s32.totalorder %s879_s12, 3  ;;  %p224_p8 = scmp.eq.s32.totalorder %s221_s21, 0 }
  0x17   : > { %1494 = sst [smem:[#allocation16_spill]] %s1314_s20  ;;  %p242_p9 = scmp.ne.s32.totalorder %s1149_s27, %s1145_s26 }
  0x18   : > { %p1320_p10 = por %p237_p7, %p236_p6  ;;  %p243_p11 = scmp.eq.s32.totalorder %s880_s13, 3 }
  0x19   : > { %s1325_s23 = scalar_select %p224_p8, %s1153_s28, %s226_s19  }
  0x1a   : > { %p1327_p12 = por %p243_p11, %p242_p9  ;;  %p882_p13 = scmp.ge.s32.totalorder %s1181_s11, 4 }
  0x1b   : > { %1496 = sst [smem:[#allocation17_spill]] %s1325_s23 }
  0x1c   : > { %s1497_s24 = scalar_select %p1327_p12, 1, 0 }
  0x1d   : > { %265 = sbr.rel (%p882_p13) target bundleno = 48 (0x30), region = 24 }
  0x1e   : > { %1498 = sst [smem:[#allocation18_spill]] %s1497_s24 }
  0x24   : > { %278 = sbr.rel (!%p1304_p3) target bundleno = 48 (0x30), region = 32  ;;  %s280_s25 = sand.u32 (%p1304_p3), 1, %s1161_s30  }
  0x25   : > { %s884_s12 = sshll.u32 (%p1304_p3), %s1173_s10, 2  ;;  %s883_s16 = sshll.u32 (%p1304_p3), %s280_s25, 4 }
  0x26   : > { %s1499_s1 = sld [smem:[#allocation19_spill]] (%p1304_p3)  ;;  %s282_s19 = scalar_lea.vmem (%p1304_p3), [#allocation6], %s883_s16 }
  0x2c   : > { %s284_s13 = scalar_lea.vmem %s1499_s1, %s884_s12 }
  0x2d   : > { %v300_v1 = vld [vmem:[%s284_s13] sm:$0xf]  ;;  %v302_v2 = vld [vmem:[%s284_s13 + $0x8] sm:$0xf]  ;;  %v304_v3 = vld [vmem:[%s284_s13 + $0x10] sm:$0xf] }
  0x2e   : > { %301 = vst [vmem:[%s282_s19] sm:$0xf] %v300_v1  ;;  %303 = vst [vmem:[%s282_s19 + $0x4] sm:$0xf] %v302_v2  ;;  %v306_v4 = vld [vmem:[%s284_s13 + $0x18] sm:$0xf] }
  0x2f   : > { %305 = vst [vmem:[%s282_s19 + $0x8] sm:$0xf] %v304_v3  ;;  %307 = vst [vmem:[%s282_s19 + $0xc] sm:$0xf] %v306_v4 }
  0x30 PF: > { %p885_p0 = scmp.ge.s32.totalorder %s1181_s11, 1  ;;  %p361_p1 = scmp.lt.s32.totalorder %s1181_s11, 5 }
  0x32   : > { %p362_p2 = pnand %p885_p0, %p361_p1 }
  0x33   : > { %s368_s18 = sand.u32 (!%p362_p2), 1, %s1157_s29   ;;  %s1482_s25 = sand.u32 (!%p362_p2), 1, %s1149_s27  }
  0x34   : > { %365 = sbr.rel (%p362_p2) target bundleno = 1186 (0x4a2), region = 85  ;;  %s1343_s12 = sshll.u32 (!%p362_p2), %s368_s18, 4 }
  0x35   : > { %s887_s16 = sshll.u32 (!%p362_p2), %s1482_s25, 4  ;;  %p421_p3 = scmp.lt.s32.totalorder (!%p362_p2), %s1169_s9, 1 }
  0x36   : > { %p428_p4 = scmp.lt.s32.totalorder (!%p362_p2), %s1165_s8, 1  ;;  %p445_p5 = scmp.eq.s32.totalorder (!%p362_p2), %s1165_s8, 0 }
  0x37   : > { %s370_s24 = scalar_lea.vmem (!%p362_p2), [#allocation6], %s1343_s12 }
  0x3b   : > { %s422_s17 = scalar_select %p421_p3, %s1169_s9, 1 }
  0x3c   : > { %s1352_s21 = scalar_select %p428_p4, %s1165_s8, 1 }
  0x3d   : > { %s888_s13 = sshll.u32 %s422_s17, 3  ;;  %s916_s19 = sshll.u32 %s422_s17, 4  ;;  %v1187_v6 = vmov (%p445_p5), 0   ;;  %v452_v8 = vlaneseq (%p445_p5)  ;;  %v1188_v13 = vmov (%p445_p5), 0.0  }
  0x3e   : > { %s1357_s14 = scalar_lea.vmem %s1470_s0, %s888_s13  ;;  %s430_s4 = scalar_lea.vmem %s1472_s2, %s1352_s21  ;;  %1043 = vset.pattern.permute.xlu0 (%p445_p5), %v1187_v6 }
  0x3f   : > { %s1366_s20 = scalar_lea.vmem %s1475_s5, %s888_s13  ;;  %s442_s28 = scalar_lea.vmem %s1476_s6, %s916_s19  ;;  %v453_v9 = vand.u32 (%p445_p5), 127, %v452_v8 }
  0x40   : > { %s1372_s17 = scalar_lea.vmem [#allocation7], %s887_s16  ;;  %449 = sbr.rel (!%p445_p5) target bundleno = 202 (0xca), region = 93  ;;  %v450_v5 = vld [vmem:[%s442_s28] sm:$0xff] (%p445_p5)  ;;  %v451_v7 = vld [vmem:[%s442_s28 + $0x8] sm:$0xff] (%p445_p5) }
  0x41   : > { %456 = vperm.xlu0 (%p445_p5), %1043, %v450_v5   ;;  %v454_v10 = vadd.s32 (%p445_p5), 128, %v453_v9 }
  0x45   : > { %459 = vperm.xlu0 (%p445_p5), %1043, %v451_v7  }
  0xc0   : > { %v457_v11 = vpop.permute.xlu0 %456 }
  0xc1   : > { %vm461_vm0 = vcmp.eq.s32.totalorder %v457_v11, %v453_v9  ;;  %vm462_vm1 = vcmp.eq.s32.totalorder %v457_v11, %v454_v10 }
  0xc2   : > { %v893_v14 = vsel %vm461_vm0, 1.0, %v1188_v13  ;;  %v894_v15 = vsel %vm462_vm1, 1.0, %v1188_v13 }
  0xc4   : > { %v460_v12 = vpop.permute.xlu0 %459 }
  0xc5   : > { %vm463_vm2 = vcmp.eq.s32.totalorder %v460_v12, %v453_v9  ;;  %vm464_vm3 = vcmp.eq.s32.totalorder %v460_v12, %v454_v10 }
  0xc6   : > { %v895_v16 = vsel %vm463_vm2, 1.0, %v1188_v13  ;;  %v896_v17 = vsel %vm464_vm3, 1.0, %v1188_v13 }
  0xc7   : > { %v473_v18 = vpack.c.bf16 %v895_v16, %v893_v14  ;;  %v474_v19 = vpack.c.bf16 %v896_v17, %v894_v15 }
  0xc9   : > { %475 = vst [vmem:[#allocation4] sm:$0xff] %v473_v18  ;;  %476 = vst [vmem:[#allocation4 + $0x8] sm:$0xff] %v474_v19 }
  0xca PF: > { %p897_p6 = scmp.ne.s32.totalorder %s1165_s8, 0 }
  0xcb   : > { %vm480_vm4 = vcmask (!%p897_p6), 7168   ;;  %v1189_v20 = vmov (!%p897_p6), -inf   ;;  %v1190_v21 = vmov (!%p897_p6), 0.0  }
  0xcc   : > { %479 = sbr.rel (%p897_p6) target bundleno = 211 (0xd3), region = 97  ;;  %481 = vst.msk [vmem:[#allocation2] sm:$0xff] (!%p897_p6), %vm480_vm4, %v1189_v20  ;;  %482 = vst.msk [vmem:[#allocation3] sm:$0xff] (!%p897_p6), %vm480_vm4, %v1190_v21 }
  0xd3 PF: > { %v1045_v22 = vld [vmem:[%s370_s24] sm:$0xff]   ;;  %v1191_v23 = vmov 0.0   ;;  %v1046_v24 = vld [vmem:[%s370_s24 + $0x8] sm:$0xff]   ;;  %vm1192_vm5 = vmmov 0   ;;  %vm508_vm6 = vcmask 261120   ;;  %s902_s1 = sshll.u32 %s1165_s8, 7 }
  0xd4   : > { %924 = vmatprep.subr.bf16.mxu0 %v1191_v23  ;;  %928 = vmatprep.mubr.msk.bf16.mxu0 %vm1192_vm5, %v1191_v23  ;;  %v483_v25 = vld [vmem:[%s1357_s14] sm:$0xff]  ;;  %s576_s28 = sshra.s32 %s902_s1, 7  ;;  %v1193_v33 = vmov 0   ;;  %vm572_vm7 = vcmask 7168   ;;  %v556_v44 = vld [vmem:[#allocation3] sm:$0xff]  ;;  %p904_p7 = scmp.ne.s32.totalorder %s1165_s8, 1 }
  0xd5   : > { %925 = vmatpush3.bf16.msra.mxu0 %v1045_v22  ;;  %v484_v26 = vpack.c.bf16 %v483_v25, %v483_v25  ;;  %s903_s30 = sshll.u32 %s576_s28, 3  ;;  %v898_v27 = vld [vmem:[%s430_s4] ss:$0 sm:$0xff]  ;;  %1044 = vset.pattern.permute.xlu0 %v1193_v33  ;;  %vm613_vm8 = vcmask (!%p904_p7), 130048   ;;  %s1399_s8 = smov (!%p904_p7), 0  }
  0xd6   : > { %926 = vmatprep.subr.bf16.mxu0 %v1191_v23  ;;  %s579_s23 = scalar_lea.vmem %s1372_s17, %s903_s30 [#allocation7]  ;;  %v554_v34 = vld [vmem:[#allocation2] sm:$0xff] }
  0xd7   : > { %v612_v48 = vld [vmem:[%s1366_s20] sm:$0xff] (!%p904_p7) }
  0xd8   : > { %v614_v49 = vsel (!%p904_p7), %vm613_vm8, %v612_v48, -inf  ;;  %v585_v50 = vld [vmem:[%s1357_s14] sm:$0xff] (!%p904_p7) }
  0xd9   : > { %927 = vmatpush3.bf16.msra.mxu0 %v1046_v24  ;;  %v905_v51 = vld [vmem:[%s1473_s3] ss:$0 sm:$0xff] (!%p904_p7) }
  0xda   : > { %v593_v52 = vmul.f32 (!%p904_p7), %v905_v51, %v585_v50  ;;  %v906_v57 = vld [vmem:[#allocation5] ss:$0 sm:$0xff] (!%p904_p7) }
  0xdc   : > { %929 = vmatmul.mubr.msk.bf16.vlgmr.msra.gmra.mrb[0].mxu0 %vm508_vm6, %v484_v26  ;;  %v594_v53 = vsel (!%p904_p7), %vm508_vm6, %v593_v52, 0.0 }
 0x1af   : > { %v546_v28 = vpop.f32.mrb[0].mxu0 }
 0x1b0   : > { %v547_v29 = vadd.f32 %v898_v27, %v546_v28  ;;  %v930_v30 = vpop.f32.mrb[1].mxu0 }
 0x1b1   : > { %v549_v31 = vpop.f32.mrb[2].mxu0 }
 0x1b2   : > { %580 = vst [vmem:[%s579_s23] sm:$0xff] %v547_v29  ;;  %552 = vmax.xlane.f32.xlu0 %v547_v29  ;;  %v931_v32 = vpop.f32.mrb[3].mxu0 }
 0x23f   : > { %v553_v35 = vpop.xlane.xlu0 %552 }
 0x240   : > { %v555_v36 = vmax.f32 %v554_v34, %v553_v35 }
 0x242   : > { %v557_v37 = vsub.f32 %v554_v34, %v555_v36  ;;  %574 = vst.msk [vmem:[#allocation2] sm:$0xff] %vm572_vm7, %v555_v36  ;;  %563 = vperm.xlu0 %1044, %v555_v36  }
 0x244   : > { %v558_v42 = vmul.f32 1.442695, %v557_v37 }
 0x249   : > { %v626_v5 = vld [vmem:[#allocation2] sm:$0xff] (!%p904_p7) }
 0x261   : > { %615 = vmax.xlane.f32.xlu0 (!%p904_p7), %v614_v49 }
 0x265   : > { %595 = vadd.xlane.f32.xlu0 (!%p904_p7), %v594_v53 }
 0x2c1   : > { %v564_v38 = vpop.permute.xlu0 %563 }
 0x2c2   : > { %v566_v39 = vsub.f32 %v547_v29, %v564_v38 }
 0x2c4   : > { %v567_v40 = vmul.f32 1.442695, %v566_v39 }
 0x2c6   : > { %1047 = vpow2.f32 %v567_v40 }
 0x2c7   : > { %1049 = vpow2.f32 %v558_v42 }
 0x2d0   : > { %v1048_v41 = vpop.eup %1047 }
 0x2d1   : > { %569 = vadd.xlane.f32.xlu1 %v1048_v41  ;;  %v1050_v43 = vpop.eup %1049 }
 0x2d2   : > { %v560_v45 = vmul.f32 %v1050_v43, %v556_v44 }
 0x2ee   : > { %v616_v54 = vpop.xlane.xlu0 (!%p904_p7), %615 }
 0x2ef   : > { %v617_v55 = vsub.f32 (!%p904_p7), %v612_v48, %v616_v54 }
 0x2f1   : > { %v618_v56 = vmul.f32 (!%p904_p7), 1.442695, %v617_v55 }
 0x2f2   : > { %v596_v58 = vpop.xlane.xlu0 (!%p904_p7), %595 }
 0x2f3   : > { %1051 = vpow2.f32 (!%p904_p7), %v618_v56  ;;  %v604_v59 = vadd.f32 (!%p904_p7), %v906_v57, %v596_v58 }
 0x2f5   : > { %v605_v62 = vsub.f32 (!%p904_p7), 0.0, %v604_v59 }
 0x2f7   : > { %v606_v63 = vmul.f32 (!%p904_p7), 1.442695, %v605_v62 }
 0x2f9   : > { %1053 = vpow2.f32 (!%p904_p7), %v606_v63 }
 0x2fd   : > { %v1052_v60 = vpop.eup (!%p904_p7), %1051 }
 0x2fe   : > { %v620_v61 = vsel (!%p904_p7), %vm613_vm8, %v1052_v60, 0.0 }
 0x2ff   : > { %621 = vadd.xlane.f32.xlu1 (!%p904_p7), %v620_v61 }
 0x303   : > { %v1054_v0 = vpop.eup (!%p904_p7), %1053 }
 0x304   : > { %v608_v1 = vadd.f32 (!%p904_p7), 1.0, %v1054_v0 }
 0x306   : > { %1055 = vrcp.f32 (!%p904_p7), %v608_v1 }
 0x310   : > { %v1056_v2 = vpop.eup (!%p904_p7), %1055 }
 0x311   : > { %v611_v4 = vsub.f32 (!%p904_p7), 1.0, %v1056_v2 }
 0x35b   : > { %584 = sbr.rel (%p904_p7) target bundleno = 1161 (0x489), region = 101 }
 0x35e   : > { %v570_v46 = vpop.xlane.xlu1 %569 }
 0x35f   : > { %v571_v47 = vadd.f32 %v570_v46, %v560_v45 }
 0x361   : > { %573 = vst.msk [vmem:[#allocation3] sm:$0xff] %vm572_vm7, %v571_v47 }
 0x368   : > { %v627_v3 = vld [vmem:[#allocation3] sm:$0xff] }
 0x369   : > { %1057 = vrcp.f32 %v627_v3 }
 0x373   : > { %v1058_v6 = vpop.eup %1057 }
 0x38c   : > { %v622_v7 = vpop.xlane.xlu1 %621 }
 0x38d   : > { %1059 = vrcp.f32 %v622_v7 }
 0x397   : > { %v1060_v8 = vpop.eup %1059 }
 0x398   : > { %v624_v9 = vmul.f32 %v1060_v8, %v1052_v60 }
 0x39a   : > { %v625_v10 = vpack.c.bf16 %v624_v9, %v624_v9 }
 0x39b LB: >> { %v1194_v11 = vmov 0.0   ;;  %vm1195_vm9 = vmmov 0   ;;  %s907_s14 = sshll.u32 %s1185_s8, 7  ;;  %v1196_v12 = vmov 0   ;;  %s635_s8 = sadd.s32 1, %s1185_s8   ;;  %s1185_s8 = sphi %s1399_s8, %s635_s8  }
 0x39c   : >> { %932 = vmatprep.subr.bf16.mxu0 %v1194_v11  ;;  %934 = vmatprep.mubr.msk.bf16.mxu0 %vm1195_vm9, %v1194_v11  ;;  %s637_s20 = sshra.s32 %s907_s14, 7  ;;  %p632_p8 = scmp.ge.s32.totalorder %s635_s8, 2  }
 0x39d   : >> { %1061 = vset.pattern.permute.xlu0 %v1196_v12  ;;  %1062 = vset.pattern.permute.xlu1 %v1196_v12  ;;  %s908_s25 = sshll.u32 %s637_s20, 3 }
 0x39e   : >> { %644 = vperm.xlu0 %1061, %v626_v5   ;;  %704 = vperm.xlu1 %1062, %v1056_v2   ;;  %s657_s12 = scalar_lea.vmem [#allocation4], %s908_s25  ;;  %s640_s16 = scalar_lea.vmem %s1372_s17, %s908_s25 [#allocation7] }
 0x39f   : >> { %v658_v13 = vld [vmem:[%s657_s12] sm:$0xff] }
 0x3a0   : >> { %933 = vmatpush3.bf16.msra.mxu0 %v658_v13  ;;  %v641_v15 = vld [vmem:[%s640_s16] sm:$0xff] }
 0x3a2   : >> { %652 = vperm.xlu0 %1061, %v1058_v6   ;;  %710 = vperm.xlu1 %1062, %v611_v4  }
 0x3a3   : >> { %935 = vmatmul.mubr.msk.bf16.vlgmr.msra.gmra.mrb[0].mxu0 %vm613_vm8, %v625_v10 }
 0x41d   : >> { %v645_v14 = vpop.permute.xlu0 %644  ;;  %v705_v20 = vpop.permute.xlu1 %704 }
 0x41e   : >> { %v647_v16 = vsub.f32 %v641_v15, %v645_v14 }
 0x420   : >> { %v648_v17 = vmul.f32 1.442695, %v647_v16 }
 0x421   : >> { %v653_v19 = vpop.permute.xlu0 %652  ;;  %v711_v22 = vpop.permute.xlu1 %710 }
 0x422   : >> { %1063 = vpow2.f32 %v648_v17 }
 0x42c   : >> { %v1064_v18 = vpop.eup %1063 }
 0x42d   : >> { %v655_v21 = vmul.f32 %v1064_v18, %v653_v19 }
 0x42f   : >> { %v707_v24 = vmul.f32 %v705_v20, %v655_v21 }
 0x476   : >> { %v696_v23 = vpop.f32.mrb[0].mxu0 }
 0x477   : >> { %v713_v25 = vmul.f32 %v711_v22, %v696_v23  ;;  %v936_v26 = vpop.f32.mrb[1].mxu0 }
 0x478   : >> { %v699_v27 = vpop.f32.mrb[2].mxu0 }
 0x479   : >> { %v714_v28 = vadd.f32 %v713_v25, %v707_v24  ;;  %v937_v29 = vpop.f32.mrb[3].mxu0 }
 0x47b   : >> { %1065 = vlog2.f32 %v714_v28 }
 0x482   : > { %634 = sbr.rel (!%p632_p8) target bundleno = 923 (0x39b), region = 163 }
 0x485   : >> { %v1066_v30 = vpop.eup %1065 }
 0x486   : >> { %v716_v31 = vmul.f32 0.6931472, %v1066_v30 }
 0x488   : >> { %717 = vst [vmem:[%s640_s16] sm:$0xff] %v716_v31 }
 0x489 PF: > { %s918_s21 = sshll.u32 %s1169_s9, 8  ;;  %s735_s18 = sshll.u32 %s1372_s17, 4  ;;  %s736_s18 = int_to_ptr.vmem [resolvable:$true] %s735_s18 }
 0x48a   : > { %s1414_s29 = scalar_lea.hbm %s1477_s7, %s918_s21  ;;  %s1500_s1 = sand.u32 1, %s1149_s27  }
 0x48b   : > { %s719_s28 = scalar_lea.sflag [#allocation8], %s1500_s1  ;;  %s1067_s30 = scalar_lea.vmem %s736_s18, 256 }
 0x48c   : > { %p1068_p9 = scmp.ne.s32.totalorder %s736_s18, %s1067_s30  ;;  %s1197_s10 = smov [#allocation7]  }
 0x48d   : > { %s1071_s15 = sshll.u32 %s1197_s10, 4  ;;  %s1072_s15 = int_to_ptr.vmem [resolvable:$false] %s1071_s15 }
 0x48e   : > { %p1069_p11 = pnand %p1068_p9, %p1320_p10  ;;  %s1073_s23 = scalar_lea.vmem %s1072_s15, 512 }
 0x48f   : > { %p1074_p0 = scmp.lt.s32.totalorder %s736_s18, %s1072_s15  ;;  %p1075_p1 = scmp.lt.s32.totalorder %s1073_s23, %s1067_s30 }
 0x490   : > { %p1070_p13 = pneg %p1069_p11 }
 0x491   : > { %p1076_p2 = por %p1075_p1, %p1074_p0 }
 0x493   : > { %p1077_p3 = pnand %p1076_p2, %p1070_p13 }
 0x495   : > { %1080 = shalt.err (!%p1077_p3)
}
 0x496   : > { %s1081_s9 = scalar_lea.hbm %s1414_s29, 256  ;;  %s1085_s24 = scalar_lea.hbm %s1477_s7, 512 }
 0x497   : > { %p1082_p4 = scmp.ne.s32.totalorder %s1414_s29, %s1081_s9  ;;  %p1086_p7 = scmp.lt.u32.totalorder %s1414_s29, %s1477_s7 }
 0x498   : > { %p1087_p8 = scmp.lt.u32.totalorder %s1085_s24, %s1081_s9  ;;  %p1089_p11 = scmp.lt.u32.totalorder %s1081_s9, %s1414_s29 }
 0x499   : > { %p1083_p5 = pnand %p1082_p4, %p1320_p10 }
 0x49a   : > { %p1088_p9 = por %p1087_p8, %p1086_p7 }
 0x49b   : > { %p1084_p6 = pneg %p1083_p5 }
 0x49c   : > { %p1090_p13 = por %p1089_p11, %p1088_p9 }
 0x49e   : > { %p1091_p0 = pnand %p1090_p13, %p1084_p6 }
 0x4a0   : > { %1094 = shalt.err (!%p1091_p0)
}
 0x4a1   : > { %938 = dma.vmem_to_hbm [thread:$0]  (%p1320_p10), %s736_s18, 256, %s1414_s29, %s719_s28  }
 0x4a2 PF: > { %p944_p1 = scmp.ge.s32.totalorder %s1181_s11, 2  ;;  %s747_s25 = sand.u32 1, %s1145_s26  }
 0x4a3   : > { %s748_s12 = scalar_lea.sflag [#allocation8], %s747_s25 }
 0x4a4   : > { %p941_p2 = pnand %p944_p1, %p1327_p12 }
 0x4a6   : > { %1140 = dma.done.wait (!%p941_p2), %s748_s12, 256  }
 0x4a7   : > { %1142 = vsyncadd (!%p941_p2), %s748_s12, 4294967040  ;;  %s22_s11 = sadd.s32 1, %s1181_s11   ;;  %s1502_s16 = sld [smem:[#allocation10_spill]] }
 0x4a8   : > { %p19_p3 = scmp.ge.s32.totalorder %s22_s11, 6   ;;  %s1503_s28 = sld [smem:[#allocation17_spill]] }
 0x4a9   : > { %s1504_s29 = sld [smem:[#allocation11_spill]]  ;;  %s1505_s30 = sld [smem:[#allocation16_spill]] }
 0x4aa   : > { %s1506_s8 = sld [smem:[#allocation12_spill]]  ;;  %s1507_s9 = sld [smem:[#allocation13_spill]] }
 0x4ab   : > { %s1508_s10 = sld [smem:[#allocation14_spill]]  ;;  %s1509_s4 = sld [smem:[#allocation15_spill]] }
 0x4ac   : > { %s1510_s26 = smov %s1149_s27  ;;  %21 = sbr.rel (!%p19_p3) target bundleno = 9 (0x9), region = 174 }
 0x4ad   : > { %s1511_s27 = smov %s1502_s16 }
 0x4b3   :  { %753 = vsyncpa [#allocation8], 1 }
 0x4b4   :  { %755 = vsyncpa [#allocation8 + $0x1], 1 }

</bundles_post_ra>
